<compile_context>
chip_gen: v5e
topology: v5e:2x2
jax: 0.10.0
libtpu: 0.0.40
codegen_flags: <defaults>
</compile_context>

<pallas_src>
import functools

import numpy as np
import jax
import jax.numpy as jnp
from jax.experimental import pallas as pl
from jax.experimental.pallas import tpu as pltpu

NEG_SLOPE = 0.2

# ---- tiling knobs (sweep per generation; tiny here, bounded on v7x) --------
GEMM_TM = 512            # pixels (lane dim) per GEMM grid step, multiple of 128
ELTWISE_ROWS = 256       # sublane rows per elementwise grid step, multiple of 8
VMEM_LIMIT = 32 * 1024 * 1024


def _lrelu(v):
    return jnp.where(v >= 0, v, NEG_SLOPE * v)


def _round_up(x, m):
    return (x + m - 1) // m * m


def _pick_tile(total, target, mult):
    """Tile size: multiple of `mult`, no larger than needed, capped at target."""
    return min(_round_up(target, mult), _round_up(total, mult))


# ------------------------- Pallas kernel bodies ----------------------------- #

def _gemm_t_kernel(wt_ref, at_ref, b_ref, o_ref, *, act_out):
    """o = [lrelu](W^T @ A^T + b).  (N,K)@(K,TM) + (N,1) -> (N,TM)."""
    acc = jnp.dot(wt_ref[...], at_ref[...], preferred_element_type=jnp.float32)
    acc = acc + b_ref[...]                         # (N,1) broadcasts over lanes
    if act_out:
        acc = _lrelu(acc)
    o_ref[...] = acc.astype(o_ref.dtype)


def _gemm_t_dual_kernel(wt_ref, at_ref, b_ref, o_ref, oact_ref):
    """Emit (W^T @ A^T + b) and its LeakyReLU in one pass (conv1 + r1)."""
    acc = jnp.dot(wt_ref[...], at_ref[...], preferred_element_type=jnp.float32)
    acc = acc + b_ref[...]
    o_ref[...] = acc.astype(o_ref.dtype)
    oact_ref[...] = _lrelu(acc).astype(oact_ref.dtype)


def _gemm_t_res_kernel(wt_ref, at_ref, b_ref, res_ref, o_ref):
    """o = lrelu(W^T @ A^T + b) + res  (conv3 + r3 + residual add, fused)."""
    acc = jnp.dot(wt_ref[...], at_ref[...], preferred_element_type=jnp.float32)
    acc = _lrelu(acc + b_ref[...])
    o_ref[...] = (acc + res_ref[...]).astype(o_ref.dtype)


def _lrelu_sub_kernel(a_ref, b_ref, o_ref):
    """o = lrelu(a) - b   (PSBlock activation fused with `h0 - x`)."""
    o_ref[...] = _lrelu(a_ref[...]) - b_ref[...]


# --------------------------- pallas_call drivers ---------------------------- #

def _gemm_pallas(kernel, wt, at, b, extra=None, out_dtypes=(jnp.float32,)):
    """Tiled transposed GEMM driver.

    wt: (Nout, K)  -- resident in VMEM (constant index_map)
    at: (K, M)     -- streamed lane-dense tiles (K, TM)
    b:  (Nout, 1)  -- resident
    extra: optional (Nout, M) residual, streamed with the output tiling.
    """
    nout, k = wt.shape
    _, m = at.shape
    tm = _pick_tile(m, GEMM_TM, 128)
    m_pad = _round_up(m, tm)
    if m_pad != m:
        at = jnp.pad(at, ((0, 0), (0, m_pad - m)))
        if extra is not None:
            extra = jnp.pad(extra, ((0, 0), (0, m_pad - m)))
    grid = (m_pad // tm,)

    in_specs = [
        pl.BlockSpec((nout, k), lambda i: (0, 0)),     # W^T: VMEM-resident
        pl.BlockSpec((k, tm), lambda i: (0, i)),       # A^T tile: streamed
        pl.BlockSpec((nout, 1), lambda i: (0, 0)),     # bias: resident
    ]
    operands = [wt, at, b]
    if extra is not None:
        in_specs.append(pl.BlockSpec((nout, tm), lambda i: (0, i)))
        operands.append(extra)

    out_specs = tuple(pl.BlockSpec((nout, tm), lambda i: (0, i))
                      for _ in out_dtypes)
    out_shape = tuple(jax.ShapeDtypeStruct((nout, m_pad), dt)
                      for dt in out_dtypes)
    single = len(out_dtypes) == 1
    if single:
        out_specs, out_shape = out_specs[0], out_shape[0]

    bytes_accessed = (at.size * at.dtype.itemsize
                      + wt.size * wt.dtype.itemsize
                      + nout * 4
                      + (0 if extra is None
                         else extra.size * extra.dtype.itemsize)
                      + sum(nout * m_pad * np.dtype(dt).itemsize
                            for dt in out_dtypes))
    cost = pl.CostEstimate(flops=2 * nout * k * m_pad, transcendentals=0,
                           bytes_accessed=int(bytes_accessed))

    outs = pl.pallas_call(
        kernel,
        grid=grid,
        in_specs=in_specs,
        out_specs=out_specs,
        out_shape=out_shape,
        compiler_params=pltpu.CompilerParams(
            dimension_semantics=("parallel",),
            vmem_limit_bytes=VMEM_LIMIT),
        cost_estimate=cost,
    )(*operands)

    if single:
        return outs[:, :m]
    return tuple(o[:, :m] for o in outs)


def gemm_t(wt, at, b, *, act_out=False):
    kernel = functools.partial(_gemm_t_kernel, act_out=act_out)
    return _gemm_pallas(kernel, wt, at, b)


def gemm_t_dual(wt, at, b):
    # second output (pre-activated copy) kept in bf16: it only feeds the next GEMM
    return _gemm_pallas(_gemm_t_dual_kernel, wt, at, b,
                        out_dtypes=(jnp.float32, jnp.bfloat16))


def gemm_t_res(wt, at, b, res):
    return _gemm_pallas(_gemm_t_res_kernel, wt, at, b, extra=res)


def lrelu_sub(a, b):
    """Elementwise lrelu(a) - b, executed as lane-dense (rows, 128) tiles."""
    shape = a.shape
    e = a.size
    lane = 128
    rows = -(-e // lane)
    blk = _pick_tile(rows, ELTWISE_ROWS, 8)
    rows_pad = _round_up(rows, blk)
    pad = rows_pad * lane - e
    af = jnp.pad(a.reshape(-1).astype(jnp.float32), (0, pad)).reshape(rows_pad, lane)
    bf = jnp.pad(b.reshape(-1).astype(jnp.float32), (0, pad)).reshape(rows_pad, lane)
    out = pl.pallas_call(
        _lrelu_sub_kernel,
        grid=(rows_pad // blk,),
        in_specs=[pl.BlockSpec((blk, lane), lambda i: (i, 0)),
                  pl.BlockSpec((blk, lane), lambda i: (i, 0))],
        out_specs=pl.BlockSpec((blk, lane), lambda i: (i, 0)),
        out_shape=jax.ShapeDtypeStruct((rows_pad, lane), jnp.float32),
        compiler_params=pltpu.CompilerParams(
            dimension_semantics=("parallel",),
            vmem_limit_bytes=VMEM_LIMIT),
        cost_estimate=pl.CostEstimate(flops=2 * rows_pad * lane,
                                      transcendentals=0,
                                      bytes_accessed=3 * rows_pad * lane * 4),
    )(af, bf)
    return out.reshape(-1)[:e].reshape(shape)


# ------------------------------ JAX glue ------------------------------------ #

def _im2col_t(x_nhwc, k, stride, pad):
    """Transposed im2col: returns (k*k*C, N*OH*OW).

    Inner K ordering: (kh, kw, c_in).  Column ordering: (n, oh, ow).
    Pure indexing glue — no FLOPs."""
    # TODO(synk): fuse this patch gather into the GEMM kernel (memory_space=pl.ANY
    # + per-(kh,kw) make_async_copy) to avoid the k*k x HBM expansion of the
    # 6x6 convs (matters most on v5e's lower HBM bandwidth).
    n, h, w, c = x_nhwc.shape
    xp = jnp.pad(x_nhwc, ((0, 0), (pad, pad), (pad, pad), (0, 0)))
    oh = (h + 2 * pad - k) // stride + 1
    ow = (w + 2 * pad - k) // stride + 1
    ih = (jnp.arange(oh) * stride)[:, None] + jnp.arange(k)[None, :]   # (oh, k)
    iw = (jnp.arange(ow) * stride)[:, None] + jnp.arange(k)[None, :]   # (ow, k)
    patches = xp[:, ih[:, :, None, None], iw[None, None, :, :], :]     # (n,oh,kh,ow,kw,c)
    pt = patches.transpose(2, 4, 5, 0, 1, 3)                           # (kh,kw,c,n,oh,ow)
    return pt.reshape(k * k * c, n * oh * ow), (n, oh, ow)


def _wmat_t(w_oihw):
    """PyTorch (O, I, kh, kw) -> (O, kh*kw*I), matching _im2col_t's K order."""
    o, i, kh, kw = w_oihw.shape
    return w_oihw.transpose(0, 2, 3, 1).reshape(o, kh * kw * i)


@jax.jit
def down_projection_block(x_nchw, params):
    w1, b1, w2, b2, w3, b3 = params
    x = jnp.transpose(x_nchw, (0, 2, 3, 1)).astype(jnp.float32)        # NHWC
    n, h, w, c = x.shape

    # --- l0 = down_conv1(x) (6x6, s2, p2); l0r = lrelu(l0) fused in-kernel ---
    a1t, (_, oh, ow) = _im2col_t(x, 6, 2, 2)                           # (36C, M)
    l0_t, l0r_t = gemm_t_dual(_wmat_t(w1).astype(jnp.bfloat16),
                              a1t.astype(jnp.bfloat16),
                              b1.reshape(-1, 1).astype(jnp.float32))
    # l0_t: (C, M) f32 (kept for the residual), l0r_t: (C, M) bf16

    # --- PSBlock: conv3x3 (no act) -> PixelShuffle(2) -> lrelu ---------------
    l0r = l0r_t.reshape(c, n, oh, ow).transpose(1, 2, 3, 0)            # NHWC bf16
    a2t, _ = _im2col_t(l0r, 3, 1, 1)                                   # (9C, M) bf16
    y2_t = gemm_t(_wmat_t(w2).astype(jnp.bfloat16), a2t,
                  b2.reshape(-1, 1).astype(jnp.float32), act_out=False)  # (4C, M)

    r = 2
    y2 = y2_t.reshape(4 * c, n, oh, ow).transpose(1, 2, 3, 0)          # (n,oh,ow,4C)
    ps = (y2.reshape(n, oh, ow, c, r, r)
            .transpose(0, 1, 4, 2, 5, 3)
            .reshape(n, oh * r, ow * r, c))                            # PixelShuffle(2)

    # --- diff = lrelu(ps) - x   (lane-dense elementwise kernel) --------------
    diff = lrelu_sub(ps, x)                                            # (n,h,w,C) f32

    # --- lrelu(down_conv3(diff)) + l0  (GEMM + bias + lrelu + residual) ------
    a3t, _ = _im2col_t(diff, 6, 2, 2)                                  # (36C, M)
    out_t = gemm_t_res(_wmat_t(w3).astype(jnp.bfloat16),
                       a3t.astype(jnp.bfloat16),
                       b3.reshape(-1, 1).astype(jnp.float32), l0_t)    # (C, M)

    return out_t.reshape(c, n, oh, ow).transpose(1, 0, 2, 3)           # NCHW


# --------------------------- pure-JAX reference ------------------------------ #

def _ref_forward(x, params):
    w1, b1, w2, b2, w3, b3 = params

    def conv(v, wt, bias, stride, pad):
        y = jax.lax.conv_general_dilated(
            v, wt, (stride, stride), [(pad, pad), (pad, pad)],
            dimension_numbers=("NCHW", "OIHW", "NCHW"),
            precision=jax.lax.Precision.HIGHEST)
        return y + bias.reshape(1, -1, 1, 1)

    l0 = conv(x, w1, b1, 2, 2)
    l0r = _lrelu(l0)
    y2 = conv(l0r, w2, b2, 1, 1)
    n, c4, hh, ww = y2.shape
    c = c4 // 4
    ps = (y2.reshape(n, c, 2, 2, hh, ww)
            .transpose(0, 1, 4, 2, 5, 3)
            .reshape(n, c, hh * 2, ww * 2))
    h0 = _lrelu(ps)
    l1 = conv(h0 - x, w3, b3, 2, 2)
    return _lrelu(l1) + l0


# --------------------------------- main -------------------------------------- #

if __name__ == "__main__":
    key = jax.random.PRNGKey(0)
    ks = jax.random.split(key, 7)
    N, C, H, W = 2, 4, 16, 16
    x = jax.random.normal(ks[0], (N, C, H, W), jnp.float32)
    w1 = 0.1 * jax.random.normal(ks[1], (C, C, 6, 6), jnp.float32)
    b1 = 0.1 * jax.random.normal(ks[2], (C,), jnp.float32)
    w2 = 0.1 * jax.random.normal(ks[3], (4 * C, C, 3, 3), jnp.float32)
    b2 = 0.1 * jax.random.normal(ks[4], (4 * C,), jnp.float32)
    w3 = 0.1 * jax.random.normal(ks[5], (C, C, 6, 6), jnp.float32)
    b3 = 0.1 * jax.random.normal(ks[6], (C,), jnp.float32)
    params = (w1, b1, w2, b2, w3, b3)

    out = jax.block_until_ready(down_projection_block(x, params))
    ref = jax.block_until_ready(_ref_forward(x, params))

    assert out.shape == (N, C, H // 2, W // 2), out.shape
    assert bool(jnp.all(jnp.isfinite(out)))
    assert bool(jnp.allclose(out, ref, atol=5e-2, rtol=5e-2)), \
        float(jnp.max(jnp.abs(out - ref)))
    print("KERNEL_OK")
</pallas_src>

<mosaic_0001>
module attributes {stable_mosaic.version = 11 : i64} {
  func.func @_gemm_t_dual_kernel(%arg0: i32, %arg1: memref<4x144xbf16, #tpu.memory_space<vmem>>, %arg2: memref<144x128xbf16, #tpu.memory_space<vmem>>, %arg3: memref<4x1xf32, #tpu.memory_space<vmem>>, %arg4: memref<4x128xf32, #tpu.memory_space<vmem>>, %arg5: memref<4x128xbf16, #tpu.memory_space<vmem>>) attributes {dimension_semantics = [#tpu.dimension_semantics<parallel>], iteration_bounds = array<i64: 1>, scalar_prefetch = 0 : i64, scratch_operands = 0 : i64, tpu.core_type = #tpu.core_type<tc>, window_params = [{pipeline_mode = #tpu.pipeline_mode<synchronous>, transform_indices = @transform_0, window_bounds = array<i64: 4, 144>}, {transform_indices = @transform_1, window_bounds = array<i64: 144, 128>}, {pipeline_mode = #tpu.pipeline_mode<synchronous>, transform_indices = @transform_2, window_bounds = array<i64: 4, 1>}, {transform_indices = @transform_3, window_bounds = array<i64: 4, 128>}, {transform_indices = @transform_4, window_bounds = array<i64: 4, 128>}]} {
    %c0 = arith.constant 0 : index
    %c0_0 = arith.constant 0 : index
    %0 = vector.load %arg1[%c0, %c0_0] : memref<4x144xbf16, #tpu.memory_space<vmem>>, vector<4x144xbf16>
    %c0_1 = arith.constant 0 : index
    %c0_2 = arith.constant 0 : index
    %1 = vector.load %arg2[%c0_1, %c0_2] : memref<144x128xbf16, #tpu.memory_space<vmem>>, vector<144x128xbf16>
    %cst = arith.constant dense<0.000000e+00> : vector<4x128xf32>
    %2 = tpu.matmul %0, %1, %cst {dimension_numbers = #tpu.dot_dimension_numbers<[1], [0], [0], [1], [0, 0, 1, 1], [], []>} : vector<4x144xbf16>, vector<144x128xbf16>, vector<4x128xf32> -> vector<4x128xf32>
    %c0_3 = arith.constant 0 : index
    %c0_4 = arith.constant 0 : index
    %3 = vector.load %arg3[%c0_3, %c0_4] : memref<4x1xf32, #tpu.memory_space<vmem>>, vector<4x1xf32>
    %4 = vector.broadcast %3 : vector<4x1xf32> to vector<4x128xf32>
    %5 = arith.addf %2, %4 : vector<4x128xf32>
    %c0_5 = arith.constant 0 : index
    %c0_6 = arith.constant 0 : index
    %6 = vector.load %arg4[%c0_5, %c0_6] : memref<4x128xf32, #tpu.memory_space<vmem>>, vector<4x128xf32>
    tpu.vector_store %arg4[%c0_5, %c0_6], %5 {strides = array<i32>} : memref<4x128xf32, #tpu.memory_space<vmem>>, vector<4x128xf32>,
    %cst_7 = arith.constant 0.000000e+00 : f32
    %7 = vector.broadcast %cst_7 : f32 to vector<4x128xf32>
    %8 = arith.cmpf oge, %5, %7 : vector<4x128xf32>
    %cst_8 = arith.constant 2.000000e-01 : f32
    %9 = vector.broadcast %cst_8 : f32 to vector<4x128xf32>
    %10 = arith.mulf %9, %5 : vector<4x128xf32>
    %11 = arith.select %8, %5, %10 : vector<4x128xi1>, vector<4x128xf32>
    %12 = arith.truncf %11 : vector<4x128xf32> to vector<4x128xbf16>
    %c0_9 = arith.constant 0 : index
    %c0_10 = arith.constant 0 : index
    %13 = vector.load %arg5[%c0_9, %c0_10] : memref<4x128xbf16, #tpu.memory_space<vmem>>, vector<4x128xbf16>
    tpu.vector_store %arg5[%c0_9, %c0_10], %12 {strides = array<i32>} : memref<4x128xbf16, #tpu.memory_space<vmem>>, vector<4x128xbf16>,
    return
  }
  func.func @transform_0(%arg0: i32) -> (i32, i32) {
    %c0_i32 = arith.constant 0 : i32
    %c0_i32_0 = arith.constant 0 : i32
    %c0_i32_1 = arith.constant 0 : i32
    return %c0_i32, %c0_i32_0 : i32, i32
  }
  func.func @transform_1(%arg0: i32) -> (i32, i32) {
    %c0_i32 = arith.constant 0 : i32
    %c0_i32_0 = arith.constant 0 : i32
    return %c0_i32, %arg0 : i32, i32
  }
  func.func @transform_2(%arg0: i32) -> (i32, i32) {
    %c0_i32 = arith.constant 0 : i32
    %c0_i32_0 = arith.constant 0 : i32
    %c0_i32_1 = arith.constant 0 : i32
    return %c0_i32, %c0_i32_0 : i32, i32
  }
  func.func @transform_3(%arg0: i32) -> (i32, i32) {
    %c0_i32 = arith.constant 0 : i32
    %c0_i32_0 = arith.constant 0 : i32
    return %c0_i32, %arg0 : i32, i32
  }
  func.func @transform_4(%arg0: i32) -> (i32, i32) {
    %c0_i32 = arith.constant 0 : i32
    %c0_i32_0 = arith.constant 0 : i32
    return %c0_i32, %arg0 : i32, i32
  }
}

module attributes {stable_mosaic.version = 11 : i64} {
  func.func @_gemm_t_kernel(%arg0: i32, %arg1: memref<16x36xbf16, #tpu.memory_space<vmem>>, %arg2: memref<36x128xbf16, #tpu.memory_space<vmem>>, %arg3: memref<16x1xf32, #tpu.memory_space<vmem>>, %arg4: memref<16x128xf32, #tpu.memory_space<vmem>>) attributes {dimension_semantics = [#tpu.dimension_semantics<parallel>], iteration_bounds = array<i64: 1>, scalar_prefetch = 0 : i64, scratch_operands = 0 : i64, tpu.core_type = #tpu.core_type<tc>, window_params = [{pipeline_mode = #tpu.pipeline_mode<synchronous>, transform_indices = @transform_0, window_bounds = array<i64: 16, 36>}, {transform_indices = @transform_1, window_bounds = array<i64: 36, 128>}, {pipeline_mode = #tpu.pipeline_mode<synchronous>, transform_indices = @transform_2, window_bounds = array<i64: 16, 1>}, {transform_indices = @transform_3, window_bounds = array<i64: 16, 128>}]} {
    %c0 = arith.constant 0 : index
    %c0_0 = arith.constant 0 : index
    %0 = vector.load %arg1[%c0, %c0_0] : memref<16x36xbf16, #tpu.memory_space<vmem>>, vector<16x36xbf16>
    %c0_1 = arith.constant 0 : index
    %c0_2 = arith.constant 0 : index
    %1 = vector.load %arg2[%c0_1, %c0_2] : memref<36x128xbf16, #tpu.memory_space<vmem>>, vector<36x128xbf16>
    %cst = arith.constant dense<0.000000e+00> : vector<16x128xf32>
    %2 = tpu.matmul %0, %1, %cst {dimension_numbers = #tpu.dot_dimension_numbers<[1], [0], [0], [1], [0, 0, 1, 1], [], []>} : vector<16x36xbf16>, vector<36x128xbf16>, vector<16x128xf32> -> vector<16x128xf32>
    %c0_3 = arith.constant 0 : index
    %c0_4 = arith.constant 0 : index
    %3 = vector.load %arg3[%c0_3, %c0_4] : memref<16x1xf32, #tpu.memory_space<vmem>>, vector<16x1xf32>
    %4 = vector.broadcast %3 : vector<16x1xf32> to vector<16x128xf32>
    %5 = arith.addf %2, %4 : vector<16x128xf32>
    %c0_5 = arith.constant 0 : index
    %c0_6 = arith.constant 0 : index
    %6 = vector.load %arg4[%c0_5, %c0_6] : memref<16x128xf32, #tpu.memory_space<vmem>>, vector<16x128xf32>
    tpu.vector_store %arg4[%c0_5, %c0_6], %5 {strides = array<i32>} : memref<16x128xf32, #tpu.memory_space<vmem>>, vector<16x128xf32>,
    return
  }
  func.func @transform_0(%arg0: i32) -> (i32, i32) {
    %c0_i32 = arith.constant 0 : i32
    %c0_i32_0 = arith.constant 0 : i32
    %c0_i32_1 = arith.constant 0 : i32
    return %c0_i32, %c0_i32_0 : i32, i32
  }
  func.func @transform_1(%arg0: i32) -> (i32, i32) {
    %c0_i32 = arith.constant 0 : i32
    %c0_i32_0 = arith.constant 0 : i32
    return %c0_i32, %arg0 : i32, i32
  }
  func.func @transform_2(%arg0: i32) -> (i32, i32) {
    %c0_i32 = arith.constant 0 : i32
    %c0_i32_0 = arith.constant 0 : i32
    %c0_i32_1 = arith.constant 0 : i32
    return %c0_i32, %c0_i32_0 : i32, i32
  }
  func.func @transform_3(%arg0: i32) -> (i32, i32) {
    %c0_i32 = arith.constant 0 : i32
    %c0_i32_0 = arith.constant 0 : i32
    return %c0_i32, %arg0 : i32, i32
  }
}

module attributes {stable_mosaic.version = 11 : i64} {
  func.func @_lrelu_sub_kernel(%arg0: i32, %arg1: memref<16x128xf32, #tpu.memory_space<vmem>>, %arg2: memref<16x128xf32, #tpu.memory_space<vmem>>, %arg3: memref<16x128xf32, #tpu.memory_space<vmem>>) attributes {dimension_semantics = [#tpu.dimension_semantics<parallel>], iteration_bounds = array<i64: 1>, scalar_prefetch = 0 : i64, scratch_operands = 0 : i64, tpu.core_type = #tpu.core_type<tc>, window_params = [{transform_indices = @transform_0, window_bounds = array<i64: 16, 128>}, {transform_indices = @transform_1, window_bounds = array<i64: 16, 128>}, {transform_indices = @transform_2, window_bounds = array<i64: 16, 128>}]} {
    %c0 = arith.constant 0 : index
    %c0_0 = arith.constant 0 : index
    %0 = vector.load %arg1[%c0, %c0_0] : memref<16x128xf32, #tpu.memory_space<vmem>>, vector<16x128xf32>
    %cst = arith.constant 0.000000e+00 : f32
    %1 = vector.broadcast %cst : f32 to vector<16x128xf32>
    %2 = arith.cmpf oge, %0, %1 : vector<16x128xf32>
    %cst_1 = arith.constant 2.000000e-01 : f32
    %3 = vector.broadcast %cst_1 : f32 to vector<16x128xf32>
    %4 = arith.mulf %3, %0 : vector<16x128xf32>
    %5 = arith.select %2, %0, %4 : vector<16x128xi1>, vector<16x128xf32>
    %c0_2 = arith.constant 0 : index
    %c0_3 = arith.constant 0 : index
    %6 = vector.load %arg2[%c0_2, %c0_3] : memref<16x128xf32, #tpu.memory_space<vmem>>, vector<16x128xf32>
    %7 = arith.subf %5, %6 : vector<16x128xf32>
    %c0_4 = arith.constant 0 : index
    %c0_5 = arith.constant 0 : index
    %8 = vector.load %arg3[%c0_4, %c0_5] : memref<16x128xf32, #tpu.memory_space<vmem>>, vector<16x128xf32>
    tpu.vector_store %arg3[%c0_4, %c0_5], %7 {strides = array<i32>} : memref<16x128xf32, #tpu.memory_space<vmem>>, vector<16x128xf32>,
    return
  }
  func.func @transform_0(%arg0: i32) -> (i32, i32) {
    %c0_i32 = arith.constant 0 : i32
    %c0_i32_0 = arith.constant 0 : i32
    return %arg0, %c0_i32 : i32, i32
  }
  func.func @transform_1(%arg0: i32) -> (i32, i32) {
    %c0_i32 = arith.constant 0 : i32
    %c0_i32_0 = arith.constant 0 : i32
    return %arg0, %c0_i32 : i32, i32
  }
  func.func @transform_2(%arg0: i32) -> (i32, i32) {
    %c0_i32 = arith.constant 0 : i32
    %c0_i32_0 = arith.constant 0 : i32
    return %arg0, %c0_i32 : i32, i32
  }
}

module attributes {stable_mosaic.version = 11 : i64} {
  func.func @_gemm_t_res_kernel(%arg0: i32, %arg1: memref<4x144xbf16, #tpu.memory_space<vmem>>, %arg2: memref<144x128xbf16, #tpu.memory_space<vmem>>, %arg3: memref<4x1xf32, #tpu.memory_space<vmem>>, %arg4: memref<4x128xf32, #tpu.memory_space<vmem>>, %arg5: memref<4x128xf32, #tpu.memory_space<vmem>>) attributes {dimension_semantics = [#tpu.dimension_semantics<parallel>], iteration_bounds = array<i64: 1>, scalar_prefetch = 0 : i64, scratch_operands = 0 : i64, tpu.core_type = #tpu.core_type<tc>, window_params = [{pipeline_mode = #tpu.pipeline_mode<synchronous>, transform_indices = @transform_0, window_bounds = array<i64: 4, 144>}, {transform_indices = @transform_1, window_bounds = array<i64: 144, 128>}, {pipeline_mode = #tpu.pipeline_mode<synchronous>, transform_indices = @transform_2, window_bounds = array<i64: 4, 1>}, {transform_indices = @transform_3, window_bounds = array<i64: 4, 128>}, {transform_indices = @transform_4, window_bounds = array<i64: 4, 128>}]} {
    %c0 = arith.constant 0 : index
    %c0_0 = arith.constant 0 : index
    %0 = vector.load %arg1[%c0, %c0_0] : memref<4x144xbf16, #tpu.memory_space<vmem>>, vector<4x144xbf16>
    %c0_1 = arith.constant 0 : index
    %c0_2 = arith.constant 0 : index
    %1 = vector.load %arg2[%c0_1, %c0_2] : memref<144x128xbf16, #tpu.memory_space<vmem>>, vector<144x128xbf16>
    %cst = arith.constant dense<0.000000e+00> : vector<4x128xf32>
    %2 = tpu.matmul %0, %1, %cst {dimension_numbers = #tpu.dot_dimension_numbers<[1], [0], [0], [1], [0, 0, 1, 1], [], []>} : vector<4x144xbf16>, vector<144x128xbf16>, vector<4x128xf32> -> vector<4x128xf32>
    %c0_3 = arith.constant 0 : index
    %c0_4 = arith.constant 0 : index
    %3 = vector.load %arg3[%c0_3, %c0_4] : memref<4x1xf32, #tpu.memory_space<vmem>>, vector<4x1xf32>
    %4 = vector.broadcast %3 : vector<4x1xf32> to vector<4x128xf32>
    %5 = arith.addf %2, %4 : vector<4x128xf32>
    %cst_5 = arith.constant 0.000000e+00 : f32
    %6 = vector.broadcast %cst_5 : f32 to vector<4x128xf32>
    %7 = arith.cmpf oge, %5, %6 : vector<4x128xf32>
    %cst_6 = arith.constant 2.000000e-01 : f32
    %8 = vector.broadcast %cst_6 : f32 to vector<4x128xf32>
    %9 = arith.mulf %8, %5 : vector<4x128xf32>
    %10 = arith.select %7, %5, %9 : vector<4x128xi1>, vector<4x128xf32>
    %c0_7 = arith.constant 0 : index
    %c0_8 = arith.constant 0 : index
    %11 = vector.load %arg4[%c0_7, %c0_8] : memref<4x128xf32, #tpu.memory_space<vmem>>, vector<4x128xf32>
    %12 = arith.addf %10, %11 : vector<4x128xf32>
    %c0_9 = arith.constant 0 : index
    %c0_10 = arith.constant 0 : index
    %13 = vector.load %arg5[%c0_9, %c0_10] : memref<4x128xf32, #tpu.memory_space<vmem>>, vector<4x128xf32>
    tpu.vector_store %arg5[%c0_9, %c0_10], %12 {strides = array<i32>} : memref<4x128xf32, #tpu.memory_space<vmem>>, vector<4x128xf32>,
    return
  }
  func.func @transform_0(%arg0: i32) -> (i32, i32) {
    %c0_i32 = arith.constant 0 : i32
    %c0_i32_0 = arith.constant 0 : i32
    %c0_i32_1 = arith.constant 0 : i32
    return %c0_i32, %c0_i32_0 : i32, i32
  }
  func.func @transform_1(%arg0: i32) -> (i32, i32) {
    %c0_i32 = arith.constant 0 : i32
    %c0_i32_0 = arith.constant 0 : i32
    return %c0_i32, %arg0 : i32, i32
  }
  func.func @transform_2(%arg0: i32) -> (i32, i32) {
    %c0_i32 = arith.constant 0 : i32
    %c0_i32_0 = arith.constant 0 : i32
    %c0_i32_1 = arith.constant 0 : i32
    return %c0_i32, %c0_i32_0 : i32, i32
  }
  func.func @transform_3(%arg0: i32) -> (i32, i32) {
    %c0_i32 = arith.constant 0 : i32
    %c0_i32_0 = arith.constant 0 : i32
    return %c0_i32, %arg0 : i32, i32
  }
  func.func @transform_4(%arg0: i32) -> (i32, i32) {
    %c0_i32 = arith.constant 0 : i32
    %c0_i32_0 = arith.constant 0 : i32
    return %c0_i32, %arg0 : i32, i32
  }
}

</mosaic_0001>

<bundles_post_ra>
// kernel: down_projection_block.4
= control target key start
LH: loop header
LB: loop body
LE: loop exit
PB: predicated region body
PF: predicated region fallthrough
CT: control target
= control target key end

     0   :  { %v192_v4 = vmov 0   ;;  %vm101_vm0 = vcmask 130048   ;;  %s257_s1 = inlined_call_operand.vmem [shape: bf16[144,128], index: 1, kind: input, shape index: {}]   ;;  %s258_s0 = inlined_call_operand.vmem [shape: bf16[4,144], index: 0, kind: input, shape index: {}]   ;;  %s259_s2 = inlined_call_operand.vmem [shape: f32[4,1], index: 2, kind: input, shape index: {}]   ;;  %s260_s3 = inlined_call_operand.vmem [shape: f32[4,128], index: 3, kind: output, shape index: {0}]   ;;  %s261_s4 = inlined_call_operand.vmem [shape: bf16[4,128], index: 4, kind: output, shape index: {1}]  }
   0x1   :  { %v188_v0 = vld [vmem:[%s257_s1 + $0x38] sm:$0xff]  ;;  %v187_v1 = vld [vmem:[%s257_s1 + $0x30] sm:$0xff]  ;;  %v189_v2 = vld [vmem:[%s257_s1 + $0x40] sm:$0xff]  ;;  %191 = vset.pattern.permute.xlu0 %v192_v4 }
   0x2   :  { %104 = vmatpush.bf16.msra.mxu0 %v188_v0  ;;  %v17_v3 = vld [vmem:[%s258_s0] sm:$0xf]  ;;  %124 = vmatpush.bf16.msra.mxu1 %v189_v2  ;;  %v186_v6 = vld [vmem:[%s257_s1 + $0x28] sm:$0xff]  ;;  %v184_v9 = vld [vmem:[%s257_s1 + $0x18] sm:$0xff] }
   0x3   :  { %43 = vst [vmem:[#allocation1] ss:$4 sm:$0xff] %v17_v3  ;;  %v36_v5 = vld [vmem:[%s259_s2] sm:$0xf]  ;;  %v183_v10 = vld [vmem:[%s257_s1 + $0x10] sm:$0xff]  ;;  %v182_v11 = vld [vmem:[%s257_s1 + $0x8] sm:$0xff] }
   0x4   :  { %39 = vperm.xlu0 %191, %v36_v5   ;;  %v185_v7 = vld [vmem:[%s257_s1 + $0x20] sm:$0xff] }
   0x5   :  { %v181_v12 = vld [vmem:[%s257_s1] sm:$0xff] }
   0x6   :  { %105 = vmatpush.bf16.msra.mxu0 %v187_v1 }
   0xa   :  { %106 = vmatpush.bf16.msra.mxu0 %v186_v6  ;;  %v45_v8 = vld.sshfl [vmem:[#allocation1 + $0x8] sm:$0xff pattern:$0x73625140]  ;;  %v44_v13 = vld.sshfl [vmem:[#allocation1] sm:$0xff pattern:$0x73625140] }
   0xb   :  { %180 = vmatmul.msk.bf16.vlgmr.msra.gmra.mxu1 %vm101_vm0, %v45_v8 }
   0xe   :  { %107 = vmatpush.bf16.msra.mxu0 %v185_v7 }
  0x12   :  { %108 = vmatpush.bf16.msra.mxu0 %v184_v9 }
  0x16   :  { %109 = vmatpush.bf16.msra.mxu0 %v183_v10 }
  0x1a   :  { %110 = vmatpush.bf16.msra.mxu0 %v182_v11 }
  0x1e   :  { %111 = vmatpush.bf16.msra.mxu0 %v181_v12 }
  0x21   :  { %112 = vmatmul.bf16.vlgmr.msra.gmra.mxu0 %v44_v13 }
  0x76   :  { %v40_v16 = vpop.permute.xlu0 %39 }
  0x88   :  { %v126_v14 = vpop.f32.mrf.mxu1 }
  0x90   :  { %v128_v15 = vpop.f32.mrf.mxu1 }
  0x9e   :  { %v113_v17 = vpop.f32.mrf.mxu0 }
  0x9f   :  { %v114_v18 = vadd.f32 %v113_v17, %v40_v16 }
  0xa1   :  { %v127_v19 = vadd.f32 %v126_v14, %v114_v18 }
  0xa3   :  { %130 = vst [vmem:[%s260_s3] sm:$0xf] %v127_v19  ;;  %vm131_vm1 = vcmp.ge.f32.partialorder %v127_v19, 0.0  ;;  %v132_v20 = vmul.f32 0.2, %v127_v19 }
  0xa5   :  { %v133_v21 = vsel %vm131_vm1, %v127_v19, %v132_v20 }
  0xa6   :  { %v134_v22 = vpack.c.bf16 %v133_v21, %v133_v21  ;;  %v115_v23 = vpop.f32.mrf.mxu0 }
  0xa8   :  { %135 = vst [vmem:[%s261_s4] sm:$0x3] %v134_v22 }

// kernel: down_projection_block.5
= control target key start
LH: loop header
LB: loop body
LE: loop exit
PB: predicated region body
PF: predicated region fallthrough
CT: control target
= control target key end

     0   :  { %v100_v1 = vmov 0   ;;  %vm58_vm0 = vcmask 1041408   ;;  %vm54_vm1 = vcmask 293888   ;;  %s145_s1 = inlined_call_operand.vmem [shape: bf16[36,128], index: 1, kind: input, shape index: {}]   ;;  %s146_s2 = inlined_call_operand.vmem [shape: f32[16,1], index: 2, kind: input, shape index: {}]   ;;  %s147_s0 = inlined_call_operand.vmem [shape: bf16[16,36], index: 0, kind: input, shape index: {}]   ;;  %s148_s3 = inlined_call_operand.vmem [shape: f32[16,128], index: 3, kind: output, shape index: {}]  }
   0x1   :  { %v21_v0 = vld [vmem:[%s145_s1 + $0x10] sm:$0x3]  ;;  %99 = vset.pattern.permute.xlu0 %v100_v1  ;;  %v22_v3 = vld [vmem:[%s146_s2] sm:$0xff]  ;;  %v97_v6 = vld [vmem:[%s145_s1 + $0x8] sm:$0xff] }
   0x2   :  { %v48_v2 = vunpack.c.l.b16 %v21_v0  ;;  %26 = vperm.xlu0 %99, %v22_v3   ;;  %v23_v7 = vld [vmem:[%s146_s2 + $0x8] sm:$0xff]  ;;  %v96_v8 = vld [vmem:[%s145_s1] sm:$0xff] }
   0x3   :  { %v95_v9 = vld [vmem:[%s147_s0] sm:$0xff] }
   0x4   :  { %v51_v4 = vpack.c.b16 %v48_v2, %v48_v2 }
   0x6   :  { %v60_v5 = vsel %vm58_vm0, %v51_v4, 0 }
   0x7   :  { %67 = vmatpush.bf16.msra.mxu0 %v60_v5 }
   0xa   :  { %31 = vperm.xlu0 %99, %v23_v7  }
   0xb   :  { %68 = vmatpush.bf16.msra.mxu0 %v97_v6 }
   0xf   :  { %69 = vmatpush.bf16.msra.mxu0 %v96_v8 }
  0x12   :  { %94 = vmatmul.msk.bf16.vlgmr.msra.gmra.mxu0 %vm54_vm1, %v95_v9 }
  0x74   :  { %v27_v10 = vpop.permute.xlu0 %26 }
  0x7c   :  { %v32_v13 = vpop.permute.xlu0 %31 }
  0x8f   :  { %v71_v11 = vpop.f32.mrf.mxu0 }
  0x90   :  { %v72_v12 = vadd.f32 %v71_v11, %v27_v10 }
  0x92   :  { %76 = vst [vmem:[%s148_s3] sm:$0xff] %v72_v12 }
  0x97   :  { %v73_v14 = vpop.f32.mrf.mxu0 }
  0x98   :  { %v74_v15 = vadd.f32 %v73_v14, %v32_v13 }
  0x9a   :  { %77 = vst [vmem:[%s148_s3 + $0x8] sm:$0xff] %v74_v15 }

// kernel: down_projection_block.6
= control target key start
LH: loop header
LB: loop body
LE: loop exit
PB: predicated region body
PF: predicated region fallthrough
CT: control target
= control target key end

     0   :  { %s62_s0 = inlined_call_operand.vmem [shape: f32[16,128], index: 0, kind: input, shape index: {}]   ;;  %s63_s1 = inlined_call_operand.vmem [shape: f32[16,128], index: 1, kind: input, shape index: {}]   ;;  %s64_s2 = inlined_call_operand.vmem [shape: f32[16,128], index: 2, kind: output, shape index: {}]  }
   0x1   :  { %v11_v0 = vld [vmem:[%s62_s0] sm:$0xff]  ;;  %v12_v2 = vld [vmem:[%s62_s0 + $0x8] sm:$0xff] }
   0x2   :  { %v19_v1 = vld [vmem:[%s63_s1] sm:$0xff]  ;;  %vm13_vm0 = vcmp.ge.f32.partialorder %v11_v0, 0.0  ;;  %v15_v3 = vmul.f32 0.2, %v11_v0  ;;  %vm14_vm1 = vcmp.ge.f32.partialorder %v12_v2, 0.0  ;;  %v20_v5 = vld [vmem:[%s63_s1 + $0x8] sm:$0xff] }
   0x3   :  { %v16_v4 = vmul.f32 0.2, %v12_v2 }
   0x4   :  { %v17_v6 = vsel %vm13_vm0, %v11_v0, %v15_v3 }
   0x5   :  { %v18_v7 = vsel %vm14_vm1, %v12_v2, %v16_v4  ;;  %v21_v8 = vsub.f32 %v17_v6, %v19_v1 }
   0x6   :  { %v22_v9 = vsub.f32 %v18_v7, %v20_v5 }
   0x7   :  { %23 = vst [vmem:[%s64_s2] sm:$0xff] %v21_v8 }
   0x8   :  { %24 = vst [vmem:[%s64_s2 + $0x8] sm:$0xff] %v22_v9 }

// kernel: down_projection_block.7
= control target key start
LH: loop header
LB: loop body
LE: loop exit
PB: predicated region body
PF: predicated region fallthrough
CT: control target
= control target key end

     0   :  { %v189_v4 = vmov 0   ;;  %vm102_vm0 = vcmask 130048   ;;  %s254_s1 = inlined_call_operand.vmem [shape: bf16[144,128], index: 1, kind: input, shape index: {}]   ;;  %s255_s0 = inlined_call_operand.vmem [shape: bf16[4,144], index: 0, kind: input, shape index: {}]   ;;  %s256_s2 = inlined_call_operand.vmem [shape: f32[4,1], index: 2, kind: input, shape index: {}]   ;;  %s257_s3 = inlined_call_operand.vmem [shape: f32[4,128], index: 3, kind: input, shape index: {}]   ;;  %s258_s4 = inlined_call_operand.vmem [shape: f32[4,128], index: 4, kind: output, shape index: {}]  }
   0x1   :  { %v185_v0 = vld [vmem:[%s254_s1 + $0x38] sm:$0xff]  ;;  %v184_v1 = vld [vmem:[%s254_s1 + $0x30] sm:$0xff]  ;;  %v186_v2 = vld [vmem:[%s254_s1 + $0x40] sm:$0xff]  ;;  %188 = vset.pattern.permute.xlu0 %v189_v4 }
   0x2   :  { %105 = vmatpush.bf16.msra.mxu0 %v185_v0  ;;  %v18_v3 = vld [vmem:[%s255_s0] sm:$0xf]  ;;  %125 = vmatpush.bf16.msra.mxu1 %v186_v2  ;;  %v183_v6 = vld [vmem:[%s254_s1 + $0x28] sm:$0xff]  ;;  %v181_v9 = vld [vmem:[%s254_s1 + $0x18] sm:$0xff] }
   0x3   :  { %44 = vst [vmem:[#allocation1] ss:$4 sm:$0xff] %v18_v3  ;;  %v37_v5 = vld [vmem:[%s256_s2] sm:$0xf]  ;;  %v180_v10 = vld [vmem:[%s254_s1 + $0x10] sm:$0xff]  ;;  %v179_v11 = vld [vmem:[%s254_s1 + $0x8] sm:$0xff] }
   0x4   :  { %40 = vperm.xlu0 %188, %v37_v5   ;;  %v182_v7 = vld [vmem:[%s254_s1 + $0x20] sm:$0xff] }
   0x5   :  { %v178_v12 = vld [vmem:[%s254_s1] sm:$0xff] }
   0x6   :  { %106 = vmatpush.bf16.msra.mxu0 %v184_v1  ;;  %v134_v21 = vld [vmem:[%s257_s3] sm:$0xf] }
   0xa   :  { %107 = vmatpush.bf16.msra.mxu0 %v183_v6  ;;  %v46_v8 = vld.sshfl [vmem:[#allocation1 + $0x8] sm:$0xff pattern:$0x73625140]  ;;  %v45_v13 = vld.sshfl [vmem:[#allocation1] sm:$0xff pattern:$0x73625140] }
   0xb   :  { %177 = vmatmul.msk.bf16.vlgmr.msra.gmra.mxu1 %vm102_vm0, %v46_v8 }
   0xe   :  { %108 = vmatpush.bf16.msra.mxu0 %v182_v7 }
  0x12   :  { %109 = vmatpush.bf16.msra.mxu0 %v181_v9 }
  0x16   :  { %110 = vmatpush.bf16.msra.mxu0 %v180_v10 }
  0x1a   :  { %111 = vmatpush.bf16.msra.mxu0 %v179_v11 }
  0x1e   :  { %112 = vmatpush.bf16.msra.mxu0 %v178_v12 }
  0x21   :  { %113 = vmatmul.bf16.vlgmr.msra.gmra.mxu0 %v45_v13 }
  0x76   :  { %v41_v16 = vpop.permute.xlu0 %40 }
  0x88   :  { %v127_v14 = vpop.f32.mrf.mxu1 }
  0x90   :  { %v129_v15 = vpop.f32.mrf.mxu1 }
  0x9e   :  { %v114_v17 = vpop.f32.mrf.mxu0 }
  0x9f   :  { %v115_v18 = vadd.f32 %v114_v17, %v41_v16 }
  0xa1   :  { %v128_v19 = vadd.f32 %v127_v14, %v115_v18 }
  0xa3   :  { %vm131_vm1 = vcmp.ge.f32.partialorder %v128_v19, 0.0  ;;  %v132_v20 = vmul.f32 0.2, %v128_v19 }
  0xa5   :  { %v133_v22 = vsel %vm131_vm1, %v128_v19, %v132_v20 }
  0xa6   :  { %v135_v23 = vadd.f32 %v134_v21, %v133_v22  ;;  %v116_v24 = vpop.f32.mrf.mxu0 }
  0xa8   :  { %136 = vst [vmem:[%s258_s4] sm:$0xf] %v135_v23 }

</bundles_post_ra>
